<compile_context>
chip_gen: v7x
topology: tpu7x:2x2x1
jax: 0.10.0
libtpu: 0.0.40
codegen_flags: <defaults>
</compile_context>

<pallas_src>
import functools

import jax
import jax.numpy as jnp
import numpy as np
from jax.experimental import pallas as pl
from jax.experimental.pallas import tpu as pltpu


def _round_up(x, m):
    return ((x + m - 1) // m) * m


def _glm_kernel(x_ref, w_ref, b_ref, o_ref, acc_ref):
    """Fused softplus(x @ W + b), accumulated over the K grid axis.

    x_ref:   [TM, TK]  bf16   (VMEM)
    w_ref:   [TK, TN]  bf16   (VMEM)
    b_ref:   [1,  TN]  f32    (VMEM, K-invariant -> resident)
    o_ref:   [TM, TN]  f32    (VMEM)
    acc_ref: [TM, TN]  f32    scratch, resident across the K axis
    """
    k = pl.program_id(2)

    @pl.when(k == 0)
    def _init():
        # Fold the bias into accumulator init (saves a VPU add per output
        # tile and avoids re-materializing the broadcast each K step).
        acc_ref[...] = jnp.broadcast_to(b_ref[...], acc_ref.shape)

    acc_ref[...] += jnp.dot(
        x_ref[...], w_ref[...], preferred_element_type=jnp.float32
    )

    @pl.when(k == pl.num_programs(2) - 1)
    def _finalize():
        z = acc_ref[...]
        # Numerically stable softplus in f32: max(z,0) + log1p(exp(-|z|)).
        # exp/log1p go to the EUP (its own bundle slot), effectively free
        # next to the MXU work.
        sp = jnp.maximum(z, 0.0) + jnp.log1p(jnp.exp(-jnp.abs(z)))
        o_ref[...] = sp.astype(o_ref.dtype)


@functools.partial(jax.jit, static_argnames=("tm", "tn", "tk"))
def glm_forward(x_flat, w, b, *, tm=256, tn=512, tk=1024):
    """softplus(x_flat @ w + b) via a tiled, pipelined Pallas kernel."""
    B, D = x_flat.shape
    Dw, N = w.shape
    assert Dw == D, f"weight rows {Dw} != flattened stim dim {D}"

    # Clip tiles to the (padded) problem; lane dims padded to 128, sublane
    # dims to 16 (bf16 sublane packing), so (8,128)/(16,128) layout rules
    # hold and stores are lane-dense.
    tm = min(tm, _round_up(B, 16))
    tk = min(tk, _round_up(D, 128))
    tn = min(tn, _round_up(N, 128))

    B_pad = _round_up(B, tm)
    D_pad = _round_up(D, tk)
    N_pad = _round_up(N, tn)

    # Zero padding: extra K columns contribute 0 to the dot; extra M rows /
    # N columns are sliced off below.
    x_p = jnp.pad(x_flat, ((0, B_pad - B), (0, D_pad - D))).astype(jnp.bfloat16)
    w_p = jnp.pad(w, ((0, D_pad - D), (0, N_pad - N))).astype(jnp.bfloat16)
    b_p = jnp.pad(
        b.reshape(1, -1).astype(jnp.float32), ((0, 0), (0, N_pad - N))
    )

    grid = (B_pad // tm, N_pad // tn, D_pad // tk)

    # VMEM budget: double-buffered bf16 inputs + resident f32 bias,
    # double-buffered f32 output, f32 accumulator.  Leave 2x headroom and
    # stay well under the 64 MiB physical VMEM of a v7x TensorCore.
    vmem_need = (
        2 * (tm * tk * 2 + tk * tn * 2)   # x, w tiles (bf16, double-buffered)
        + 2 * tn * 4                      # bias
        + 2 * tm * tn * 4                 # output tiles (f32, double-buffered)
        + tm * tn * 4                     # accumulator scratch
    )
    vmem_limit = int(min(max(2 * vmem_need, 16 * 1024 * 1024), 48 * 1024 * 1024))

    cost = pl.CostEstimate(
        flops=2 * B_pad * D_pad * N_pad,
        transcendentals=2 * B_pad * N_pad,  # exp + log1p per output element
        bytes_accessed=(
            B_pad * D_pad * 2 + D_pad * N_pad * 2 + N_pad * 4 + B_pad * N_pad * 4
        ),
    )

    out_p = pl.pallas_call(
        _glm_kernel,
        out_shape=jax.ShapeDtypeStruct((B_pad, N_pad), jnp.float32),
        grid_spec=pltpu.PrefetchScalarGridSpec(
            num_scalar_prefetch=0,
            grid=grid,
            in_specs=[
                pl.BlockSpec((tm, tk), lambda i, j, k: (i, k)),
                pl.BlockSpec((tk, tn), lambda i, j, k: (k, j)),
                pl.BlockSpec((1, tn), lambda i, j, k: (0, j)),
            ],
            out_specs=pl.BlockSpec((tm, tn), lambda i, j, k: (i, j)),
            scratch_shapes=[pltpu.VMEM((tm, tn), jnp.float32)],
        ),
        compiler_params=pltpu.CompilerParams(
            dimension_semantics=("parallel", "parallel", "arbitrary"),
            vmem_limit_bytes=vmem_limit,
        ),
        cost_estimate=cost,
    )(x_p, w_p, b_p)

    return out_p[:B, :N]


class ModelWrapperJAX:
    """JAX analogue of ModelWrapper: forward(batch) -> self.model(batch)."""

    def __init__(self, w, b, cids=None, meta_cids=None, name="unnamed"):
        n_cells = w.shape[1]
        # cids / meta_cids are stored (used by training_step in the original
        # PyTorch wrapper) but, exactly like the PyTorch forward, they do not
        # subset the forward output.
        self.cids = np.arange(n_cells) if cids is None else np.asarray(cids)
        self.meta_cids = (
            np.arange(len(self.cids)) if meta_cids is None else np.asarray(meta_cids)
        )
        self.name = name
        self._w = w
        self._b = b

    def _model(self, batch):
        stim = batch["stim"]  # NCHW, matching the PyTorch module convention
        B = stim.shape[0]
        x_flat = stim.reshape(B, -1)  # glue: flatten outside the kernel
        return glm_forward(x_flat, self._w, self._b)

    def forward(self, batch):
        # forward just delegates to the wrapped model, exactly like
        # ModelWrapper.forward in PyTorch.
        return self._model(batch)

    __call__ = forward


if __name__ == "__main__":
    # Small shapes: batch=8, channels=4, spatial=16x16, n_cells=32.
    B, C, H, W = 8, 4, 16, 16
    N_CELLS = 32
    D = C * H * W

    key = jax.random.PRNGKey(0)
    k_stim, k_w, k_b = jax.random.split(key, 3)

    stim = jax.random.normal(k_stim, (B, C, H, W), dtype=jnp.float32)
    w = 0.05 * jax.random.normal(k_w, (D, N_CELLS), dtype=jnp.float32)
    b = 0.01 * jax.random.normal(k_b, (1, N_CELLS), dtype=jnp.float32)

    wrapper = ModelWrapperJAX(w, b, cids=np.arange(N_CELLS), name="glm_lnp")

    batch = {"stim": stim}
    y_hat = wrapper(batch)
    y_hat = jax.block_until_ready(y_hat)

    # Sanity: reference with the same bf16-rounded inputs and f32 accumulation.
    x_flat = stim.reshape(B, -1)
    x_bf = x_flat.astype(jnp.bfloat16).astype(jnp.float32)
    w_bf = w.astype(jnp.bfloat16).astype(jnp.float32)
    ref = jax.nn.softplus(
        jnp.dot(x_bf, w_bf, precision=jax.lax.Precision.HIGHEST) + b
    )
    assert y_hat.shape == (B, N_CELLS)
    assert jnp.allclose(y_hat, ref, atol=2e-3, rtol=2e-3)
    # Loose check against the full-f32 math as well (bf16 matmul inputs).
    ref_f32 = jax.nn.softplus(x_flat @ w + b)
    assert jnp.allclose(y_hat, ref_f32, atol=5e-2, rtol=5e-2)

    # TODO(synk): training_step / validation_step (Poisson loss, dfs masking,
    # compute_reg_loss, prepare_regularization) are host-side training logic
    # on top of forward and are not kernelized here.
    print("KERNEL_OK")
</pallas_src>

<mosaic_0001>
module attributes {stable_mosaic.version = 11 : i64} {
  func.func @_glm_kernel(%arg0: i32, %arg1: i32, %arg2: i32, %arg3: memref<16x1024xbf16, #tpu.memory_space<vmem>>, %arg4: memref<1024x128xbf16, #tpu.memory_space<vmem>>, %arg5: memref<1x128xf32, #tpu.memory_space<vmem>>, %arg6: memref<16x128xf32, #tpu.memory_space<vmem>>, %arg7: memref<16x128xf32, #tpu.memory_space<vmem>>) attributes {dimension_semantics = [#tpu.dimension_semantics<parallel>, #tpu.dimension_semantics<parallel>, #tpu.dimension_semantics<arbitrary>], iteration_bounds = array<i64: 1, 1, 1>, scalar_prefetch = 0 : i64, scratch_operands = 1 : i64, tpu.core_type = #tpu.core_type<tc>, window_params = [{transform_indices = @transform_0, window_bounds = array<i64: 16, 1024>}, {transform_indices = @transform_1, window_bounds = array<i64: 1024, 128>}, {transform_indices = @transform_2, window_bounds = array<i64: 1, 128>}, {transform_indices = @transform_3, window_bounds = array<i64: 16, 128>}]} {
    %c0_i32 = arith.constant 0 : i32
    %0 = arith.cmpi eq, %arg2, %c0_i32 : i32
    %1 = arith.extui %0 : i1 to i32
    %c0_i32_0 = arith.constant 0 : i32
    %2 = arith.cmpi ne, %1, %c0_i32_0 : i32
    scf.if %2 {
      %c0_10 = arith.constant 0 : index
      %c0_11 = arith.constant 0 : index
      %12 = vector.load %arg5[%c0_10, %c0_11] : memref<1x128xf32, #tpu.memory_space<vmem>>, vector<1x128xf32>
      %13 = vector.shape_cast %12 : vector<1x128xf32> to vector<1x128xf32>
      %14 = vector.broadcast %13 : vector<1x128xf32> to vector<16x128xf32>
      %c0_12 = arith.constant 0 : index
      %c0_13 = arith.constant 0 : index
      %15 = vector.load %arg7[%c0_12, %c0_13] : memref<16x128xf32, #tpu.memory_space<vmem>>, vector<16x128xf32>
      tpu.vector_store %arg7[%c0_12, %c0_13], %14 {strides = array<i32>} : memref<16x128xf32, #tpu.memory_space<vmem>>, vector<16x128xf32>,
    } else {
    }
    %c0 = arith.constant 0 : index
    %c0_1 = arith.constant 0 : index
    %3 = vector.load %arg7[%c0, %c0_1] : memref<16x128xf32, #tpu.memory_space<vmem>>, vector<16x128xf32>
    %c0_2 = arith.constant 0 : index
    %c0_3 = arith.constant 0 : index
    %4 = vector.load %arg3[%c0_2, %c0_3] : memref<16x1024xbf16, #tpu.memory_space<vmem>>, vector<16x1024xbf16>
    %c0_4 = arith.constant 0 : index
    %c0_5 = arith.constant 0 : index
    %5 = vector.load %arg4[%c0_4, %c0_5] : memref<1024x128xbf16, #tpu.memory_space<vmem>>, vector<1024x128xbf16>
    %cst = arith.constant dense<0.000000e+00> : vector<16x128xf32>
    %6 = tpu.matmul %4, %5, %cst {dimension_numbers = #tpu.dot_dimension_numbers<[1], [0], [0], [1], [0, 0, 1, 1], [], []>} : vector<16x1024xbf16>, vector<1024x128xbf16>, vector<16x128xf32> -> vector<16x128xf32>
    %7 = arith.addf %3, %6 : vector<16x128xf32>
    %c0_6 = arith.constant 0 : index
    %c0_7 = arith.constant 0 : index
    %8 = vector.load %arg7[%c0_6, %c0_7] : memref<16x128xf32, #tpu.memory_space<vmem>>, vector<16x128xf32>
    tpu.vector_store %arg7[%c0_6, %c0_7], %7 {strides = array<i32>} : memref<16x128xf32, #tpu.memory_space<vmem>>, vector<16x128xf32>,
    %c0_i32_8 = arith.constant 0 : i32
    %9 = arith.cmpi eq, %arg2, %c0_i32_8 : i32
    %10 = arith.extui %9 : i1 to i32
    %c0_i32_9 = arith.constant 0 : i32
    %11 = arith.cmpi ne, %10, %c0_i32_9 : i32
    scf.if %11 {
      %c0_10 = arith.constant 0 : index
      %c0_11 = arith.constant 0 : index
      %12 = vector.load %arg7[%c0_10, %c0_11] : memref<16x128xf32, #tpu.memory_space<vmem>>, vector<16x128xf32>
      %cst_12 = arith.constant 0.000000e+00 : f32
      %13 = vector.broadcast %cst_12 : f32 to vector<16x128xf32>
      %14 = arith.maximumf %12, %13 : vector<16x128xf32>
      %15 = math.absf %12 : vector<16x128xf32>
      %cst_13 = arith.constant 0.000000e+00 : f32
      %16 = vector.broadcast %cst_13 : f32 to vector<16x128xf32>
      %17 = arith.subf %16, %15 : vector<16x128xf32>
      %18 = math.exp %17 : vector<16x128xf32>
      %19 = math.log1p %18 : vector<16x128xf32>
      %20 = arith.addf %14, %19 : vector<16x128xf32>
      %c0_14 = arith.constant 0 : index
      %c0_15 = arith.constant 0 : index
      %21 = vector.load %arg6[%c0_14, %c0_15] : memref<16x128xf32, #tpu.memory_space<vmem>>, vector<16x128xf32>
      tpu.vector_store %arg6[%c0_14, %c0_15], %20 {strides = array<i32>} : memref<16x128xf32, #tpu.memory_space<vmem>>, vector<16x128xf32>,
    } else {
    }
    return
  }
  func.func @transform_0(%arg0: i32, %arg1: i32, %arg2: i32) -> (i32, i32) {
    %c0_i32 = arith.constant 0 : i32
    return %arg0, %arg2 : i32, i32
  }
  func.func @transform_1(%arg0: i32, %arg1: i32, %arg2: i32) -> (i32, i32) {
    %c0_i32 = arith.constant 0 : i32
    return %arg2, %arg1 : i32, i32
  }
  func.func @transform_2(%arg0: i32, %arg1: i32, %arg2: i32) -> (i32, i32) {
    %c0_i32 = arith.constant 0 : i32
    %c0_i32_0 = arith.constant 0 : i32
    return %c0_i32, %arg1 : i32, i32
  }
  func.func @transform_3(%arg0: i32, %arg1: i32, %arg2: i32) -> (i32, i32) {
    %c0_i32 = arith.constant 0 : i32
    return %arg0, %arg1 : i32, i32
  }
}

</mosaic_0001>

<bundles_post_ra>
// kernel: glm_forward.1
= control target key start
LH: loop header
LB: loop body
LE: loop exit
PB: predicated region body
PF: predicated region fallthrough
CT: control target
= control target key end

     0   :  { %s1277_s1 = inlined_call_operand.vmem [shape: bf16[1024,128], index: 1, kind: input, shape index: {}]   ;;  %s1278_s0 = inlined_call_operand.vmem [shape: bf16[16,1024], index: 0, kind: input, shape index: {}]   ;;  %s1279_s2 = inlined_call_operand.vmem [shape: f32[1,128], index: 2, kind: input, shape index: {}]   ;;  %s1280_s3 = inlined_call_operand.vmem [shape: f32[16,128], index: 3, kind: output, shape index: {}]  }
   0x1   :  { %v960_v0 = vld [vmem:[%s1277_s1 + $0x40] sm:$0xff]   ;;  %v964_v4 = vld [vmem:[%s1277_s1 + $0x48] sm:$0xff]   ;;  %v968_v8 = vld [vmem:[%s1277_s1 + $0x50] sm:$0xff]  }
   0x2   :  { %v961_v1 = vld [vmem:[%s1277_s1 + $0xc0] sm:$0xff]   ;;  %872 = vmatprep.subr.bf16.mxu0 %v960_v0  ;;  %v965_v5 = vld [vmem:[%s1277_s1 + $0xc8] sm:$0xff]   ;;  %v969_v9 = vld [vmem:[%s1277_s1 + $0xd0] sm:$0xff]  }
   0x3   :  { %v962_v2 = vld [vmem:[%s1277_s1] sm:$0xff]   ;;  %894 = vmatprep.subr.bf16.mxu1 %v961_v1  ;;  %v966_v6 = vld [vmem:[%s1277_s1 + $0x8] sm:$0xff]   ;;  %v970_v10 = vld [vmem:[%s1277_s1 + $0x10] sm:$0xff]  }
   0x4   :  { %v963_v3 = vld [vmem:[%s1277_s1 + $0x80] sm:$0xff]   ;;  %873 = vmatpush3.bf16.msra.mxu0 %v962_v2  ;;  %v967_v7 = vld [vmem:[%s1277_s1 + $0x88] sm:$0xff]   ;;  %v971_v11 = vld [vmem:[%s1277_s1 + $0x90] sm:$0xff]  }
   0x5   :  { %895 = vmatpush3.bf16.msra.mxu1 %v963_v3  ;;  %874 = vmatprep.subr.bf16.mxu0 %v964_v4  ;;  %v972_v12 = vld [vmem:[%s1277_s1 + $0x58] sm:$0xff]   ;;  %v976_v16 = vld [vmem:[%s1277_s1 + $0x60] sm:$0xff]   ;;  %v980_v20 = vld [vmem:[%s1277_s1 + $0x68] sm:$0xff]  }
   0x6   :  { %896 = vmatprep.subr.bf16.mxu1 %v965_v5  ;;  %v973_v13 = vld [vmem:[%s1277_s1 + $0xd8] sm:$0xff]   ;;  %v977_v17 = vld [vmem:[%s1277_s1 + $0xe0] sm:$0xff]   ;;  %v981_v21 = vld [vmem:[%s1277_s1 + $0xe8] sm:$0xff]  }
   0x7   :  { %v974_v14 = vld [vmem:[%s1277_s1 + $0x18] sm:$0xff]   ;;  %v978_v18 = vld [vmem:[%s1277_s1 + $0x20] sm:$0xff]   ;;  %v982_v22 = vld [vmem:[%s1277_s1 + $0x28] sm:$0xff]  }
   0x8   :  { %875 = vmatpush3.bf16.msra.mxu0 %v966_v6  ;;  %v975_v15 = vld [vmem:[%s1277_s1 + $0x98] sm:$0xff]   ;;  %v979_v19 = vld [vmem:[%s1277_s1 + $0xa0] sm:$0xff]   ;;  %v983_v23 = vld [vmem:[%s1277_s1 + $0xa8] sm:$0xff]  }
   0x9   :  { %897 = vmatpush3.bf16.msra.mxu1 %v967_v7  ;;  %876 = vmatprep.subr.bf16.mxu0 %v968_v8  ;;  %v984_v24 = vld [vmem:[%s1277_s1 + $0x70] sm:$0xff]   ;;  %v988_v28 = vld [vmem:[%s1277_s1 + $0x78] sm:$0xff]   ;;  %v30_v32 = vld [vmem:[%s1278_s0] sm:$0xff] }
   0xa   :  { %898 = vmatprep.subr.bf16.mxu1 %v969_v9  ;;  %v985_v25 = vld [vmem:[%s1277_s1 + $0xf0] sm:$0xff]   ;;  %v989_v29 = vld [vmem:[%s1277_s1 + $0xf8] sm:$0xff]   ;;  %v34_v33 = vld [vmem:[%s1278_s0 + $0x20] sm:$0xff] }
   0xb   :  { %v986_v26 = vld [vmem:[%s1277_s1 + $0x30] sm:$0xff]   ;;  %v990_v30 = vld [vmem:[%s1277_s1 + $0x38] sm:$0xff]   ;;  %v31_v34 = vld [vmem:[%s1278_s0 + $0x8] sm:$0xff]  ;;  %v800_v35 = vcombine.low %v30_v32, %v34_v33  ;;  %v801_v36 = vcombine.high %v30_v32, %v34_v33 }
   0xc   :  { %877 = vmatpush3.bf16.msra.mxu0 %v970_v10  ;;  %v987_v27 = vld [vmem:[%s1277_s1 + $0xb0] sm:$0xff]   ;;  %v991_v31 = vld [vmem:[%s1277_s1 + $0xb8] sm:$0xff]   ;;  %v35_v37 = vld [vmem:[%s1278_s0 + $0x28] sm:$0xff] }
   0xd   :  { %899 = vmatpush3.bf16.msra.mxu1 %v971_v11  ;;  %878 = vmatprep.subr.bf16.mxu0 %v972_v12  ;;  %v802_v38 = vcombine.low %v31_v34, %v35_v37  ;;  %v803_v39 = vcombine.high %v31_v34, %v35_v37  ;;  %v992_v40 = vld [vmem:[%s1277_s1 + $0x140] sm:$0xff]   ;;  %v996_v44 = vld [vmem:[%s1277_s1 + $0x148] sm:$0xff]   ;;  %v1000_v48 = vld [vmem:[%s1277_s1 + $0x150] sm:$0xff]  }
   0xe   :  { %900 = vmatprep.subr.bf16.mxu1 %v973_v13  ;;  %622 = vmatprep.mubr.bf16.mxu0 %v801_v36  ;;  %v993_v41 = vld [vmem:[%s1277_s1 + $0x1c0] sm:$0xff]   ;;  %v997_v45 = vld [vmem:[%s1277_s1 + $0x1c8] sm:$0xff]   ;;  %v1001_v49 = vld [vmem:[%s1277_s1 + $0x1d0] sm:$0xff]  }
   0xf   :  { %663 = vmatprep.mubr.bf16.mxu1 %v803_v39  ;;  %v994_v42 = vld [vmem:[%s1277_s1 + $0x100] sm:$0xff]   ;;  %v998_v46 = vld [vmem:[%s1277_s1 + $0x108] sm:$0xff]   ;;  %v1002_v50 = vld [vmem:[%s1277_s1 + $0x110] sm:$0xff]  }
  0x10   :  { %879 = vmatpush3.bf16.msra.mxu0 %v974_v14  ;;  %v995_v43 = vld [vmem:[%s1277_s1 + $0x180] sm:$0xff]   ;;  %v999_v47 = vld [vmem:[%s1277_s1 + $0x188] sm:$0xff]   ;;  %v1003_v51 = vld [vmem:[%s1277_s1 + $0x190] sm:$0xff]  }
  0x11   :  { %901 = vmatpush3.bf16.msra.mxu1 %v975_v15  ;;  %880 = vmatprep.subr.bf16.mxu0 %v976_v16  ;;  %v1004_v52 = vld [vmem:[%s1277_s1 + $0x158] sm:$0xff]   ;;  %v1008_v56 = vld [vmem:[%s1277_s1 + $0x160] sm:$0xff]   ;;  %v1012_v60 = vld [vmem:[%s1277_s1 + $0x168] sm:$0xff]  }
  0x12   :  { %902 = vmatprep.subr.bf16.mxu1 %v977_v17  ;;  %v1005_v53 = vld [vmem:[%s1277_s1 + $0x1d8] sm:$0xff]   ;;  %v1009_v57 = vld [vmem:[%s1277_s1 + $0x1e0] sm:$0xff]   ;;  %v1013_v61 = vld [vmem:[%s1277_s1 + $0x1e8] sm:$0xff]  }
  0x13   :  { %v1006_v54 = vld [vmem:[%s1277_s1 + $0x118] sm:$0xff]   ;;  %v1010_v58 = vld [vmem:[%s1277_s1 + $0x120] sm:$0xff]   ;;  %v1014_v62 = vld [vmem:[%s1277_s1 + $0x128] sm:$0xff]  }
  0x14   :  { %881 = vmatpush3.bf16.msra.mxu0 %v978_v18  ;;  %v1007_v55 = vld [vmem:[%s1277_s1 + $0x198] sm:$0xff]   ;;  %v1011_v59 = vld [vmem:[%s1277_s1 + $0x1a0] sm:$0xff]   ;;  %v1015_v63 = vld [vmem:[%s1277_s1 + $0x1a8] sm:$0xff]  }
  0x15   :  { %903 = vmatpush3.bf16.msra.mxu1 %v979_v19  ;;  %882 = vmatprep.subr.bf16.mxu0 %v980_v20  ;;  %v1016_v0 = vld [vmem:[%s1277_s1 + $0x170] sm:$0xff]   ;;  %v1020_v4 = vld [vmem:[%s1277_s1 + $0x178] sm:$0xff]  }
  0x16   :  { %904 = vmatprep.subr.bf16.mxu1 %v981_v21  ;;  %v1017_v1 = vld [vmem:[%s1277_s1 + $0x1f0] sm:$0xff]   ;;  %v1021_v5 = vld [vmem:[%s1277_s1 + $0x1f8] sm:$0xff]  }
  0x17   :  { %v1018_v2 = vld [vmem:[%s1277_s1 + $0x130] sm:$0xff]   ;;  %v1022_v6 = vld [vmem:[%s1277_s1 + $0x138] sm:$0xff]  }
  0x18   :  { %883 = vmatpush3.bf16.msra.mxu0 %v982_v22  ;;  %v1019_v3 = vld [vmem:[%s1277_s1 + $0x1b0] sm:$0xff]   ;;  %v1023_v7 = vld [vmem:[%s1277_s1 + $0x1b8] sm:$0xff]  }
  0x19   :  { %905 = vmatpush3.bf16.msra.mxu1 %v983_v23  ;;  %884 = vmatprep.subr.bf16.mxu0 %v984_v24  ;;  %v32_v8 = vld [vmem:[%s1278_s0 + $0x10] sm:$0xff]  ;;  %v33_v12 = vld [vmem:[%s1278_s0 + $0x18] sm:$0xff] }
  0x1a   :  { %906 = vmatprep.subr.bf16.mxu1 %v985_v25  ;;  %v36_v9 = vld [vmem:[%s1278_s0 + $0x30] sm:$0xff]  ;;  %v37_v13 = vld [vmem:[%s1278_s0 + $0x38] sm:$0xff] }
  0x1b   :  { %v804_v10 = vcombine.low %v32_v8, %v36_v9  ;;  %v805_v11 = vcombine.high %v32_v8, %v36_v9  ;;  %v806_v14 = vcombine.low %v33_v12, %v37_v13  ;;  %v807_v15 = vcombine.high %v33_v12, %v37_v13 }
  0x1c   :  { %885 = vmatpush3.bf16.msra.mxu0 %v986_v26 }
  0x1d   :  { %907 = vmatpush3.bf16.msra.mxu1 %v987_v27  ;;  %886 = vmatprep.subr.bf16.mxu0 %v988_v28 }
  0x1e   :  { %908 = vmatprep.subr.bf16.mxu1 %v989_v29 }
  0x20   :  { %887 = vmatpush3.bf16.msra.mxu0 %v990_v30 }
  0x21   :  { %909 = vmatpush3.bf16.msra.mxu1 %v991_v31  ;;  %916 = vmatprep.subr.bf16.mxu0 %v992_v40 }
  0x22   :  { %938 = vmatprep.subr.bf16.mxu1 %v993_v41 }
  0x23   :  { %623 = vmatmul.mubr.bf16.vlgmr.msra.gmra.mrb[0].mxu0 %v800_v35 }
  0x24   :  { %664 = vmatmul.mubr.bf16.vlgmr.msra.gmra.mrb[0].mxu1 %v802_v38  ;;  %917 = vmatpush3.bf16.msra.mxu0 %v994_v42  ;;  %v799_v42 = vld [vmem:[%s1279_s2] ss:$0 sm:$0xff] }
  0x25   :  { %939 = vmatpush3.bf16.msra.mxu1 %v995_v43  ;;  %918 = vmatprep.subr.bf16.mxu0 %v996_v44 }
  0x26   :  { %940 = vmatprep.subr.bf16.mxu1 %v997_v45  ;;  %704 = vmatprep.mubr.bf16.mxu0 %v805_v11 }
  0x27   :  { %745 = vmatprep.mubr.bf16.mxu1 %v807_v15 }
  0x28   :  { %919 = vmatpush3.bf16.msra.mxu0 %v998_v46 }
  0x29   :  { %941 = vmatpush3.bf16.msra.mxu1 %v999_v47  ;;  %920 = vmatprep.subr.bf16.mxu0 %v1000_v48 }
  0x2a   :  { %942 = vmatprep.subr.bf16.mxu1 %v1001_v49 }
  0x2c   :  { %921 = vmatpush3.bf16.msra.mxu0 %v1002_v50 }
  0x2d   :  { %943 = vmatpush3.bf16.msra.mxu1 %v1003_v51  ;;  %922 = vmatprep.subr.bf16.mxu0 %v1004_v52 }
  0x2e   :  { %944 = vmatprep.subr.bf16.mxu1 %v1005_v53 }
  0x30   :  { %923 = vmatpush3.bf16.msra.mxu0 %v1006_v54 }
  0x31   :  { %945 = vmatpush3.bf16.msra.mxu1 %v1007_v55  ;;  %924 = vmatprep.subr.bf16.mxu0 %v1008_v56 }
  0x32   :  { %946 = vmatprep.subr.bf16.mxu1 %v1009_v57 }
  0x34   :  { %925 = vmatpush3.bf16.msra.mxu0 %v1010_v58 }
  0x35   :  { %947 = vmatpush3.bf16.msra.mxu1 %v1011_v59  ;;  %926 = vmatprep.subr.bf16.mxu0 %v1012_v60 }
  0x36   :  { %948 = vmatprep.subr.bf16.mxu1 %v1013_v61 }
  0x38   :  { %927 = vmatpush3.bf16.msra.mxu0 %v1014_v62 }
  0x39   :  { %949 = vmatpush3.bf16.msra.mxu1 %v1015_v63  ;;  %928 = vmatprep.subr.bf16.mxu0 %v1016_v0 }
  0x3a   :  { %950 = vmatprep.subr.bf16.mxu1 %v1017_v1 }
  0x3c   :  { %929 = vmatpush3.bf16.msra.mxu0 %v1018_v2 }
  0x3d   :  { %951 = vmatpush3.bf16.msra.mxu1 %v1019_v3  ;;  %930 = vmatprep.subr.bf16.mxu0 %v1020_v4 }
  0x3e   :  { %952 = vmatprep.subr.bf16.mxu1 %v1021_v5 }
  0x40   :  { %931 = vmatpush3.bf16.msra.mxu0 %v1022_v6 }
  0x41   :  { %953 = vmatpush3.bf16.msra.mxu1 %v1023_v7 }
  0x43   :  { %705 = vmatmul.mubr.bf16.vlgmr.msra.gmra.mrb[4].mxu0 %v804_v10 }
  0x44   :  { %746 = vmatmul.mubr.bf16.vlgmr.msra.gmra.mrb[4].mxu1 %v806_v14 }
  0xf6   :  { %v888_v16 = vpop.f32.mrb[0].mxu0 }
  0xf7   :  { %v910_v17 = vpop.f32.mrb[0].mxu1  ;;  %v889_v18 = vpop.f32.mrb[1].mxu0 }
  0xf8   :  { %v890_v19 = vadd.f32 %v889_v18, %v888_v16  ;;  %v911_v20 = vpop.f32.mrb[1].mxu1  ;;  %v891_v21 = vpop.f32.mrb[2].mxu0 }
  0xf9   :  { %v912_v22 = vadd.f32 %v911_v20, %v910_v17  ;;  %v913_v23 = vpop.f32.mrb[2].mxu1  ;;  %v892_v24 = vpop.f32.mrb[3].mxu0 }
  0xfa   :  { %v893_v25 = vadd.f32 %v892_v24, %v891_v21  ;;  %v914_v26 = vpop.f32.mrb[3].mxu1 }
  0xfb   :  { %v666_v27 = vadd.f32 %v912_v22, %v890_v19  ;;  %v915_v28 = vadd.f32 %v914_v26, %v913_v23 }
  0xfd   :  { %v669_v29 = vadd.f32 %v915_v28, %v893_v25 }
 0x116   :  { %v932_v30 = vpop.f32.mrb[4].mxu0 }
 0x117   :  { %v954_v31 = vpop.f32.mrb[4].mxu1  ;;  %v933_v32 = vpop.f32.mrb[5].mxu0 }
 0x118   :  { %v934_v33 = vadd.f32 %v933_v32, %v932_v30  ;;  %v955_v34 = vpop.f32.mrb[5].mxu1  ;;  %v935_v35 = vpop.f32.mrb[6].mxu0 }
 0x119   :  { %v956_v36 = vadd.f32 %v955_v34, %v954_v31  ;;  %v957_v37 = vpop.f32.mrb[6].mxu1  ;;  %v936_v38 = vpop.f32.mrb[7].mxu0 }
 0x11a   :  { %v707_v39 = vadd.f32 %v934_v33, %v666_v27  ;;  %v937_v40 = vadd.f32 %v936_v38, %v935_v35  ;;  %v958_v41 = vpop.f32.mrb[7].mxu1 }
 0x11b   :  { %v959_v43 = vadd.f32 %v958_v41, %v957_v37 }
 0x11c   :  { %v748_v44 = vadd.f32 %v956_v36, %v707_v39  ;;  %v710_v45 = vadd.f32 %v937_v40, %v669_v29 }
 0x11e   :  { %v754_v46 = vadd.f32 %v799_v42, %v748_v44  ;;  %v751_v47 = vadd.f32 %v959_v43, %v710_v45 }
 0x120   :  { %v765_v48 = vand.u32 2147483647, %v754_v46  ;;  %v755_v49 = vadd.f32 %v799_v42, %v751_v47  ;;  %v763_v5 = vmax.f32 %v754_v46, 0.0 }
 0x122   :  { %v767_v50 = vsub.f32 0.0, %v765_v48  ;;  %v766_v51 = vand.u32 2147483647, %v755_v49  ;;  %v764_v10 = vmax.f32 %v755_v49, 0.0 }
 0x124   :  { %v769_v52 = vmul.f32 1.442695, %v767_v50  ;;  %v768_v53 = vsub.f32 0.0, %v766_v51 }
 0x126   :  { %1024 = vpow2.f32 %v769_v52  ;;  %v771_v54 = vmul.f32 1.442695, %v768_v53 }
 0x128   :  { %1026 = vpow2.f32 %v771_v54 }
 0x130   :  { %v1025_v55 = vpop.eup %1024 }
 0x131   :  { %v773_v56 = vadd.f32 1.0, %v1025_v55  ;;  %v776_v59 = vmul.f32 -0.5, %v1025_v55  ;;  %v779_v62 = vand.u32 2147483647, %v1025_v55 }
 0x132   :  { %v1027_v57 = vpop.eup %1026 }
 0x133   :  { %1028 = vlog2.f32 %v773_v56  ;;  %v782_v58 = vadd.f32 1.0, %v1027_v57  ;;  %v785_v60 = vmul.f32 -0.5, %v1027_v57  ;;  %v777_v61 = vadd.f32 1.0, %v776_v59 }
 0x134   :  { %v788_v1 = vand.u32 2147483647, %v1027_v57  ;;  %vm780_vm0 = vcmp.lt.f32.partialorder %v779_v62, 0.0004427343 }
 0x135   :  { %1030 = vlog2.f32 %v782_v58  ;;  %v786_v63 = vadd.f32 1.0, %v785_v60  ;;  %v778_v3 = vmul.f32 %v1025_v55, %v777_v61 }
 0x136   :  { %vm789_vm1 = vcmp.lt.f32.partialorder %v788_v1, 0.0004427343 }
 0x137   :  { %v787_v8 = vmul.f32 %v1027_v57, %v786_v63 }
 0x13d   :  { %v1029_v0 = vpop.eup %1028 }
 0x13e   :  { %v775_v2 = vmul.f32 0.6931472, %v1029_v0 }
 0x13f   :  { %v1031_v4 = vpop.eup %1030 }
 0x140   :  { %v781_v6 = vsel %vm780_vm0, %v778_v3, %v775_v2  ;;  %v784_v7 = vmul.f32 0.6931472, %v1031_v4 }
 0x141   :  { %v791_v9 = vadd.f32 %v781_v6, %v763_v5 }
 0x142   :  { %v790_v11 = vsel %vm789_vm1, %v787_v8, %v784_v7 }
 0x143   :  { %793 = vst [vmem:[%s1280_s3] sm:$0xff] %v791_v9  ;;  %v792_v12 = vadd.f32 %v790_v11, %v764_v10 }
 0x145   :  { %794 = vst [vmem:[%s1280_s3 + $0x8] sm:$0xff] %v792_v12 }

</bundles_post_ra>
